<compile_context>
chip_gen: v7x
topology: tpu7x:2x2x1
jax: 0.10.0
libtpu: 0.0.40
codegen_flags: <defaults>
</compile_context>

<pallas_src>
import jax
import jax.numpy as jnp
from jax.experimental import pallas as pl
from jax.experimental.pallas import tpu as pltpu

_CHUNK = 128  # lane-chunk processed per inner-loop step (1 vreg wide)


def _bf16_valu_available():
    # v6e / v7x VALUs are bf16-capable; v5e and older are not (bf16 math there
    # would lower to unpack/convert sequences and regress), so default to f32.
    try:
        kind = jax.devices()[0].device_kind.lower()
    except Exception:
        return False
    return any(tag in kind for tag in ("v6", "v7", "tpu7"))


def _make_mlp_kernel(*, k_in, chunk, n_chunks):
    def kernel(xT_ref, w1_ref, b1_ref, w2_ref, b2_ref, o_ref):
        # xT: (k_in, TB) compute dtype, w1: (H, k_in), b1: (H, 1) compute dtype,
        # w2: (H, 1) f32, b2: (1, 1) f32 scalar in SMEM, out: (1, TB) f32.
        b2 = b2_ref[0, 0]

        @pl.loop(0, n_chunks)
        def _(c):
            start = pl.multiple_of(c * chunk, chunk)

            # Layer 1: K=4 contraction as VPU broadcast FMAs (keep off the MXU).
            # h stays register-resident: (H, chunk) = 16 vregs f32 / 8 vregs bf16.
            h = b1_ref[...] + w1_ref[:, 0:1] * xT_ref[pl.ds(0, 1), pl.ds(start, chunk)]
            for k in range(1, k_in):
                h = h + w1_ref[:, k:k + 1] * xT_ref[pl.ds(k, 1), pl.ds(start, chunk)]
            h = jnp.maximum(h, 0.0)                                  # ReLU

            # Layer 2: VPU multiply + cross-sublane reduce (f32 accumulation).
            # An M=1 MXU dot would waste the systolic array and force h through
            # VMEM; the XLU reduce rides an otherwise idle slot.
            prod = h.astype(jnp.float32) * w2_ref[...]               # (H, chunk)
            y = jnp.sum(prod, axis=0, keepdims=True) + b2            # (1, chunk)
            o_ref[:, pl.ds(start, chunk)] = y.astype(o_ref.dtype)

    return kernel


def mlp_forward(x, w1, b1, w2, b2, *, tb=32768, compute_dtype=None):
    """y = relu(x @ w1.T + b1) @ w2.T + b2, with x: (B, 4) -> y: (B, 1).

    Weights use PyTorch Linear layout: w1 (128, 4), b1 (128,), w2 (1, 128), b2 (1,).
    `tb` is the requested batch-tile size (rows per grid step); `compute_dtype`
    controls layer-1 math (None = bf16 on v6e/v7x, f32 otherwise).
    """
    B, k_in = x.shape
    H = w1.shape[0]
    assert w1.shape == (H, k_in) and b1.shape == (H,)
    assert w2.shape == (1, H) and b2.shape == (1,)

    if compute_dtype is None:
        compute_dtype = jnp.bfloat16 if _bf16_valu_available() else jnp.float32
    compute_dtype = jnp.dtype(compute_dtype)

    # Tile selection: lane-granular, low padding waste, and n_tiles >= 2 when
    # possible so v7x's two TensorCores both get work.
    bp0 = pl.cdiv(B, _CHUNK) * _CHUNK
    n_tiles = pl.cdiv(bp0, max(_CHUNK, int(tb)))
    if n_tiles == 1 and bp0 >= 2 * _CHUNK:
        n_tiles = 2
    tbk = pl.cdiv(pl.cdiv(bp0, n_tiles), _CHUNK) * _CHUNK
    bp = tbk * n_tiles
    n_chunks = tbk // _CHUNK

    # Wrapper-side layout plumbing only (tiny: 16 B/row).  Upstream producers
    # that already emit feature-major (4, B) activations can skip this.
    xT = jnp.pad(x, ((0, bp - B), (0, 0))).T.astype(compute_dtype)    # (k_in, bp)
    w1c = w1.astype(compute_dtype)                                    # (H, k_in)
    b1c = b1.reshape(H, 1).astype(compute_dtype)                      # (H, 1)
    w2c = w2.reshape(H, 1).astype(jnp.float32)                        # (H, 1), f32 accum
    b2s = b2.reshape(1, 1).astype(jnp.float32)                        # SMEM scalar

    kernel = _make_mlp_kernel(k_in=k_in, chunk=_CHUNK, n_chunks=n_chunks)

    cost = pl.CostEstimate(
        flops=int(bp) * H * (2 * k_in + 3),
        transcendentals=0,
        bytes_accessed=int(
            xT.size * xT.dtype.itemsize + bp * 4
            + w1c.size * w1c.dtype.itemsize + b1c.size * b1c.dtype.itemsize
            + w2c.size * 4 + 4
        ),
    )

    out = pl.pallas_call(
        kernel,
        out_shape=jax.ShapeDtypeStruct((1, bp), jnp.float32),
        grid=(n_tiles,),
        in_specs=[
            pl.BlockSpec((k_in, tbk), lambda i: (0, i)),          # x tile (pipelined)
            pl.BlockSpec((H, k_in), lambda i: (0, 0)),            # W1, VMEM-resident
            pl.BlockSpec((H, 1), lambda i: (0, 0)),               # b1, VMEM-resident
            pl.BlockSpec((H, 1), lambda i: (0, 0)),               # W2^T (f32), resident
            pl.BlockSpec(memory_space=pltpu.MemorySpace.SMEM),    # b2 scalar
        ],
        out_specs=pl.BlockSpec((1, tbk), lambda i: (0, i)),       # lane-dense output
        compiler_params=pltpu.CompilerParams(
            dimension_semantics=("parallel",),
            vmem_limit_bytes=16 * 1024 * 1024,
        ),
        cost_estimate=cost,
    )(xT, w1c, b1c, w2c, b2s)

    return out[0, :B].reshape(B, 1)


def init_params(key):
    # PyTorch nn.Linear default-style init (uniform +-1/sqrt(fan_in)), PyTorch shapes.
    k1, k2, k3, k4 = jax.random.split(key, 4)
    bound1 = 1.0 / jnp.sqrt(4.0)
    bound2 = 1.0 / jnp.sqrt(128.0)
    w1 = jax.random.uniform(k1, (128, 4), jnp.float32, -bound1, bound1)
    b1 = jax.random.uniform(k2, (128,), jnp.float32, -bound1, bound1)
    w2 = jax.random.uniform(k3, (1, 128), jnp.float32, -bound2, bound2)
    b2 = jax.random.uniform(k4, (1,), jnp.float32, -bound2, bound2)
    return w1, b1, w2, b2


def mlp_reference(x, w1, b1, w2, b2):
    h = jnp.maximum(x @ w1.T + b1[None, :], 0.0)
    return h @ w2.T + b2[None, :]


if __name__ == "__main__":
    key = jax.random.PRNGKey(0)
    kx, kp, kx2 = jax.random.split(key, 3)
    w1, b1, w2, b2 = init_params(kp)

    # 1) Small batch, f32 compute path, tight tolerance.
    batch = 8
    x = jax.random.normal(kx, (batch, 4), jnp.float32)
    y = mlp_forward(x, w1, b1, w2, b2, compute_dtype=jnp.float32)
    jax.block_until_ready(y)
    ref = mlp_reference(x, w1, b1, w2, b2)
    assert y.shape == (batch, 1)
    assert jnp.allclose(y, ref, atol=1e-5, rtol=1e-5)

    # 2) Ragged batch, multi-tile grid (3 steps), f32, tight tolerance.
    x2 = jax.random.normal(kx2, (300, 4), jnp.float32)
    ref2 = mlp_reference(x2, w1, b1, w2, b2)
    y2 = mlp_forward(x2, w1, b1, w2, b2, tb=128, compute_dtype=jnp.float32)
    jax.block_until_ready(y2)
    assert y2.shape == (300, 1)
    assert jnp.allclose(y2, ref2, atol=1e-5, rtol=1e-5)

    # 3) Multi-chunk inner loop (2 tiles x 2 chunks), f32, tight tolerance.
    y3 = mlp_forward(x2, w1, b1, w2, b2, tb=512, compute_dtype=jnp.float32)
    jax.block_until_ready(y3)
    assert jnp.allclose(y3, ref2, atol=1e-5, rtol=1e-5)

    # 4) Default path (auto dtype: bf16 layer-1 on v6e/v7x, f32 elsewhere) with a
    #    tolerance that accommodates bf16 layer-1 numerics.
    y4 = mlp_forward(x2, w1, b1, w2, b2)
    jax.block_until_ready(y4)
    assert y4.shape == (300, 1)
    assert jnp.allclose(y4, ref2, atol=2e-2, rtol=2e-2)

    print("KERNEL_OK")
</pallas_src>

<mosaic_0001>
module attributes {stable_mosaic.version = 11 : i64} {
  func.func @kernel(%arg0: i32, %arg1: memref<4x128xf32, #tpu.memory_space<vmem>>, %arg2: memref<128x4xf32, #tpu.memory_space<vmem>>, %arg3: memref<128x1xf32, #tpu.memory_space<vmem>>, %arg4: memref<128x1xf32, #tpu.memory_space<vmem>>, %arg5: memref<1x1xf32, #tpu.memory_space<smem>>, %arg6: memref<1x128xf32, #tpu.memory_space<vmem>>) attributes {dimension_semantics = [#tpu.dimension_semantics<parallel>], iteration_bounds = array<i64: 1>, scalar_prefetch = 0 : i64, scratch_operands = 0 : i64, tpu.core_type = #tpu.core_type<tc>, window_params = [{transform_indices = @transform_0, window_bounds = array<i64: 4, 128>}, {pipeline_mode = #tpu.pipeline_mode<synchronous>, transform_indices = @transform_1, window_bounds = array<i64: 128, 4>}, {pipeline_mode = #tpu.pipeline_mode<synchronous>, transform_indices = @transform_2, window_bounds = array<i64: 128, 1>}, {pipeline_mode = #tpu.pipeline_mode<synchronous>, transform_indices = @transform_3, window_bounds = array<i64: 128, 1>}, {transform_indices = @transform_4, window_bounds = array<i64: 1, 1>}, {transform_indices = @transform_5, window_bounds = array<i64: 1, 128>}]} {
    %c0 = arith.constant 0 : index
    %c0_0 = arith.constant 0 : index
    %0 = memref.load %arg5[%c0, %c0_0] : memref<1x1xf32, #tpu.memory_space<smem>>
    %c0_i32 = arith.constant 0 : i32
    %c1_i32 = arith.constant 1 : i32
    %1 = arith.muli %c0_i32, %c1_i32 : i32
    %c0_i32_1 = arith.constant 0 : i32
    %2 = arith.addi %c0_i32_1, %1 : i32
    %c128_i32 = arith.constant 128 : i32
    %3 = arith.muli %2, %c128_i32 : i32
    %4 = tpu.assume_multiple %3, 128 : i32
    %c0_2 = arith.constant 0 : index
    %c0_3 = arith.constant 0 : index
    %5 = vector.load %arg3[%c0_2, %c0_3] : memref<128x1xf32, #tpu.memory_space<vmem>>, vector<128x1xf32>
    %c0_4 = arith.constant 0 : index
    %c0_5 = arith.constant 0 : index
    %6 = vector.load %arg2[%c0_4, %c0_5] : memref<128x4xf32, #tpu.memory_space<vmem>>, vector<128x1xf32>
    %c0_6 = arith.constant 0 : index
    %7 = arith.index_cast %4 : i32 to index
    %8 = vector.load %arg1[%c0_6, %7] : memref<4x128xf32, #tpu.memory_space<vmem>>, vector<1x128xf32>
    %9 = vector.broadcast %6 : vector<128x1xf32> to vector<128x128xf32>
    %10 = vector.broadcast %8 : vector<1x128xf32> to vector<128x128xf32>
    %11 = arith.mulf %9, %10 : vector<128x128xf32>
    %12 = vector.broadcast %5 : vector<128x1xf32> to vector<128x128xf32>
    %13 = arith.addf %12, %11 : vector<128x128xf32>
    %c0_7 = arith.constant 0 : index
    %c1 = arith.constant 1 : index
    %14 = vector.load %arg2[%c0_7, %c1] : memref<128x4xf32, #tpu.memory_space<vmem>>, vector<128x1xf32>
    %c1_8 = arith.constant 1 : index
    %15 = arith.index_cast %4 : i32 to index
    %16 = vector.load %arg1[%c1_8, %15] : memref<4x128xf32, #tpu.memory_space<vmem>>, vector<1x128xf32>
    %17 = vector.broadcast %14 : vector<128x1xf32> to vector<128x128xf32>
    %18 = vector.broadcast %16 : vector<1x128xf32> to vector<128x128xf32>
    %19 = arith.mulf %17, %18 : vector<128x128xf32>
    %20 = arith.addf %13, %19 : vector<128x128xf32>
    %c0_9 = arith.constant 0 : index
    %c2 = arith.constant 2 : index
    %21 = vector.load %arg2[%c0_9, %c2] : memref<128x4xf32, #tpu.memory_space<vmem>>, vector<128x1xf32>
    %c2_10 = arith.constant 2 : index
    %22 = arith.index_cast %4 : i32 to index
    %23 = vector.load %arg1[%c2_10, %22] : memref<4x128xf32, #tpu.memory_space<vmem>>, vector<1x128xf32>
    %24 = vector.broadcast %21 : vector<128x1xf32> to vector<128x128xf32>
    %25 = vector.broadcast %23 : vector<1x128xf32> to vector<128x128xf32>
    %26 = arith.mulf %24, %25 : vector<128x128xf32>
    %27 = arith.addf %20, %26 : vector<128x128xf32>
    %c0_11 = arith.constant 0 : index
    %c3 = arith.constant 3 : index
    %28 = vector.load %arg2[%c0_11, %c3] : memref<128x4xf32, #tpu.memory_space<vmem>>, vector<128x1xf32>
    %c3_12 = arith.constant 3 : index
    %29 = arith.index_cast %4 : i32 to index
    %30 = vector.load %arg1[%c3_12, %29] : memref<4x128xf32, #tpu.memory_space<vmem>>, vector<1x128xf32>
    %31 = vector.broadcast %28 : vector<128x1xf32> to vector<128x128xf32>
    %32 = vector.broadcast %30 : vector<1x128xf32> to vector<128x128xf32>
    %33 = arith.mulf %31, %32 : vector<128x128xf32>
    %34 = arith.addf %27, %33 : vector<128x128xf32>
    %cst = arith.constant 0.000000e+00 : f32
    %35 = vector.broadcast %cst : f32 to vector<128x128xf32>
    %36 = arith.maximumf %34, %35 : vector<128x128xf32>
    %c0_13 = arith.constant 0 : index
    %c0_14 = arith.constant 0 : index
    %37 = vector.load %arg4[%c0_13, %c0_14] : memref<128x1xf32, #tpu.memory_space<vmem>>, vector<128x1xf32>
    %38 = vector.broadcast %37 : vector<128x1xf32> to vector<128x128xf32>
    %39 = arith.mulf %36, %38 : vector<128x128xf32>
    %cst_15 = arith.constant dense<0.000000e+00> : vector<128xf32>
    %40 = vector.multi_reduction <add>, %39, %cst_15 [0] : vector<128x128xf32> to vector<128xf32>
    %41 = vector.shape_cast %40 : vector<128xf32> to vector<1x128xf32>
    %42 = vector.broadcast %0 : f32 to vector<1x128xf32>
    %43 = arith.addf %41, %42 : vector<1x128xf32>
    %c0_16 = arith.constant 0 : index
    %44 = arith.index_cast %4 : i32 to index
    %45 = vector.load %arg6[%c0_16, %44] : memref<1x128xf32, #tpu.memory_space<vmem>>, vector<1x128xf32>
    tpu.vector_store %arg6[%c0_16, %44], %43 {strides = array<i32>} : memref<1x128xf32, #tpu.memory_space<vmem>>, vector<1x128xf32>,
    %c1_i32_17 = arith.constant 1 : i32
    return
  }
  func.func @transform_0(%arg0: i32) -> (i32, i32) {
    %c0_i32 = arith.constant 0 : i32
    %c0_i32_0 = arith.constant 0 : i32
    return %c0_i32, %arg0 : i32, i32
  }
  func.func @transform_1(%arg0: i32) -> (i32, i32) {
    %c0_i32 = arith.constant 0 : i32
    %c0_i32_0 = arith.constant 0 : i32
    %c0_i32_1 = arith.constant 0 : i32
    return %c0_i32, %c0_i32_0 : i32, i32
  }
  func.func @transform_2(%arg0: i32) -> (i32, i32) {
    %c0_i32 = arith.constant 0 : i32
    %c0_i32_0 = arith.constant 0 : i32
    %c0_i32_1 = arith.constant 0 : i32
    return %c0_i32, %c0_i32_0 : i32, i32
  }
  func.func @transform_3(%arg0: i32) -> (i32, i32) {
    %c0_i32 = arith.constant 0 : i32
    %c0_i32_0 = arith.constant 0 : i32
    %c0_i32_1 = arith.constant 0 : i32
    return %c0_i32, %c0_i32_0 : i32, i32
  }
  func.func @transform_4(%arg0: i32) -> (i32, i32) {
    %c0_i32 = arith.constant 0 : i32
    %c0_i32_0 = arith.constant 0 : i32
    %c0_i32_1 = arith.constant 0 : i32
    return %c0_i32, %c0_i32_0 : i32, i32
  }
  func.func @transform_5(%arg0: i32) -> (i32, i32) {
    %c0_i32 = arith.constant 0 : i32
    %c0_i32_0 = arith.constant 0 : i32
    return %c0_i32, %arg0 : i32, i32
  }
}

</mosaic_0001>

<bundles_post_ra>
// kernel: tpu_custom_call.1
= control target key start
LH: loop header
LB: loop body
LE: loop exit
PB: predicated region body
PF: predicated region fallthrough
CT: control target
= control target key end

     0   :  { %v765_v2 = vmov 1   ;;  %v766_v3 = vmov 0   ;;  %s1257_s0 = inlined_call_operand.vmem [shape: f32[4,128], index: 0, kind: input, shape index: {}]   ;;  %s1258_s1 = inlined_call_operand.vmem [shape: f32[128,4], index: 1, kind: input, shape index: {}]   ;;  %s1259_s2 = inlined_call_operand.vmem [shape: f32[128,1], index: 2, kind: input, shape index: {}]   ;;  %s1260_s3 = inlined_call_operand.vmem [shape: f32[128,1], index: 3, kind: input, shape index: {}]   ;;  %s1261_s4 = inlined_call_operand.<no memory space> [shape: f32[1,1], index: 4, kind: input, shape index: {}]   ;;  %s1262_s5 = inlined_call_operand.hbm [shape: f32[1,128], index: 5, kind: output, shape index: {}]  }
   0x1   :  { %v803_v0 = vld [vmem:[%s1258_s1 + $0x10] sm:$0xff]  ;;  %v808_v1 = vld [vmem:[%s1258_s1] sm:$0xff]  ;;  %731 = vset.pattern.permute.xlu0 %v765_v2  ;;  %730 = vset.pattern.permute.xlu1 %v766_v3  ;;  %v816_v4 = vld [vmem:[%s1258_s1 + $0x18] sm:$0xff] }
   0x2   :  { %68 = vperm.xlu1 %730, %v803_v0   ;;  %254 = vperm.xlu0 %731, %v808_v1   ;;  %v823_v5 = vld [vmem:[%s1258_s1 + $0x28] sm:$0xff]  ;;  %v830_v6 = vld [vmem:[%s1258_s1 + $0x38] sm:$0xff] }
   0x6   :  { %73 = vperm.xlu1 %730, %v816_v4   ;;  %266 = vperm.xlu0 %731, %v816_v4  }
   0xa   :  { %83 = vperm.xlu1 %730, %v823_v5   ;;  %274 = vperm.xlu0 %731, %v823_v5  }
   0xb   :  { %11 = vsyncpa [#allocation4], 0  ;;  %v837_v7 = vld [vmem:[%s1258_s1 + $0x48] sm:$0xff]  ;;  %v844_v8 = vld [vmem:[%s1258_s1 + $0x58] sm:$0xff]  ;;  %v767_v13 = vmov 2   ;;  %v768_v27 = vmov 3  }
   0xc   :  { %v851_v9 = vld [vmem:[%s1258_s1 + $0x68] sm:$0xff]  ;;  %v858_v10 = vld [vmem:[%s1258_s1 + $0x78] sm:$0xff]  ;;  %v877_v15 = vld [vmem:[%s1258_s1 + $0x20] sm:$0xff]  ;;  %s769_s17 = smov [#allocation3]  }
   0xd   :  { %v24_v11 = vld [vmem:[%s1259_s2 + $0x8] sm:$0xff]  ;;  %v26_v14 = vld [vmem:[%s1259_s2 + $0x18] sm:$0xff]  ;;  %v886_v17 = vld [vmem:[%s1258_s1 + $0x30] sm:$0xff]  ;;  %s713_s18 = sshll.u32 %s769_s17, 4  ;;  %s714_s18 = int_to_ptr.vmem [resolvable:$true] %s713_s18 }
   0xe   :  { %93 = vperm.xlu1 %730, %v830_v6   ;;  %282 = vperm.xlu0 %731, %v830_v6   ;;  %v868_v12 = vld [vmem:[%s1258_s1 + $0x8] sm:$0xff]  ;;  %v30_v18 = vld [vmem:[%s1259_s2 + $0x38] sm:$0xff]  ;;  %v895_v19 = vld [vmem:[%s1258_s1 + $0x40] sm:$0xff]  ;;  %s741_s19 = scalar_lea.vmem %s714_s18, 16  ;;  %s745_s20 = scalar_lea.vmem %s714_s18, 32 }
   0xf   :  { %v28_v16 = vld [vmem:[%s1259_s2 + $0x28] sm:$0xff]  ;;  %v904_v21 = vld [vmem:[%s1258_s1 + $0x50] sm:$0xff]  ;;  %v34_v22 = vld [vmem:[%s1259_s2 + $0x58] sm:$0xff]  ;;  %p742_p0 = scmp.ne.s32.totalorder %s714_s18, %s741_s19  ;;  %p746_p1 = scmp.lt.s32.totalorder %s714_s18, %s714_s18 }
  0x10   :  { %v32_v20 = vld [vmem:[%s1259_s2 + $0x48] sm:$0xff]  ;;  %v913_v23 = vld [vmem:[%s1258_s1 + $0x60] sm:$0xff]  ;;  %v922_v25 = vld [vmem:[%s1258_s1 + $0x70] sm:$0xff]  ;;  %p747_p2 = scmp.lt.s32.totalorder %s745_s20, %s741_s19 }
  0x11   :  { %v36_v24 = vld [vmem:[%s1259_s2 + $0x68] sm:$0xff]  ;;  %v38_v26 = vld [vmem:[%s1259_s2 + $0x78] sm:$0xff]  ;;  %v23_v28 = vld [vmem:[%s1259_s2] sm:$0xff] }
  0x12   :  { %103 = vperm.xlu1 %730, %v837_v7   ;;  %290 = vperm.xlu0 %731, %v837_v7   ;;  %v25_v29 = vld [vmem:[%s1259_s2 + $0x10] sm:$0xff]  ;;  %v27_v30 = vld [vmem:[%s1259_s2 + $0x20] sm:$0xff]  ;;  %v574_v46 = vld [vmem:[%s1260_s3 + $0x18] sm:$0xff]  ;;  %p748_p3 = por %p747_p2, %p746_p1 }
  0x13   :  { %v29_v31 = vld [vmem:[%s1259_s2 + $0x30] sm:$0xff]  ;;  %v31_v32 = vld [vmem:[%s1259_s2 + $0x40] sm:$0xff]  ;;  %v572_v50 = vld [vmem:[%s1260_s3 + $0x8] sm:$0xff] }
  0x14   :  { %v33_v33 = vld [vmem:[%s1259_s2 + $0x50] sm:$0xff]  ;;  %v35_v34 = vld [vmem:[%s1259_s2 + $0x60] sm:$0xff]  ;;  %v576_v53 = vld [vmem:[%s1260_s3 + $0x28] sm:$0xff]  ;;  %p749_p4 = pnand %p748_p3, %p742_p0 }
  0x15   :  { %v37_v37 = vld [vmem:[%s1259_s2 + $0x70] sm:$0xff]  ;;  %v571_v40 = vld [vmem:[%s1260_s3] sm:$0xff]  ;;  %v578_v59 = vld [vmem:[%s1260_s3 + $0x38] sm:$0xff] }
  0x16   :  { %113 = vperm.xlu1 %730, %v844_v8   ;;  %298 = vperm.xlu0 %731, %v844_v8   ;;  %v573_v43 = vld [vmem:[%s1260_s3 + $0x10] sm:$0xff]  ;;  %v575_v49 = vld [vmem:[%s1260_s3 + $0x20] sm:$0xff] }
  0x17   :  { %v577_v56 = vld [vmem:[%s1260_s3 + $0x30] sm:$0xff]  ;;  %v579_v62 = vld [vmem:[%s1260_s3 + $0x40] sm:$0xff] }
  0x18   :  { %v1033_v63 = vld [vmem:[%s1257_s0] ss:$0 sm:$0xff] }
  0x1a   :  { %123 = vperm.xlu1 %730, %v851_v9   ;;  %306 = vperm.xlu0 %731, %v851_v9  }
  0x1e   :  { %133 = vperm.xlu1 %730, %v858_v10   ;;  %314 = vperm.xlu0 %731, %v858_v10  }
  0x22   :  { %734 = vset.pattern.permute.xlu0 %v767_v13  ;;  %163 = vperm.xlu1 %730, %v24_v11  }
  0x23   :  { %359 = vperm.xlu0 %734, %v868_v12  }
  0x26   :  { %173 = vperm.xlu1 %730, %v26_v14  }
  0x27   :  { %371 = vperm.xlu0 %734, %v877_v15  }
  0x2a   :  { %183 = vperm.xlu1 %730, %v28_v16  }
  0x2b   :  { %379 = vperm.xlu0 %734, %v886_v17  }
  0x2e   :  { %193 = vperm.xlu1 %730, %v30_v18   ;;  %v581_v18 = vld [vmem:[%s1260_s3 + $0x50] sm:$0xff] }
  0x2f   :  { %387 = vperm.xlu0 %734, %v895_v19  }
  0x32   :  { %203 = vperm.xlu1 %730, %v32_v20  }
  0x33   :  { %395 = vperm.xlu0 %734, %v904_v21  }
  0x36   :  { %213 = vperm.xlu1 %730, %v34_v22  }
  0x37   :  { %403 = vperm.xlu0 %734, %v913_v23  }
  0x3a   :  { %223 = vperm.xlu1 %730, %v36_v24  }
  0x3b   :  { %411 = vperm.xlu0 %734, %v922_v25  }
  0x3e   :  { %233 = vperm.xlu1 %730, %v38_v26  }
  0x3f   :  { %735 = vset.pattern.permute.xlu0 %v768_v27 }
  0x40   :  { %456 = vperm.xlu0 %735, %v808_v1  }
  0x42   :  { %732 = vset.pattern.permute.xlu1 %v765_v2 }
  0x43   :  { %258 = vperm.xlu1 %732, %v868_v12  }
  0x44   :  { %468 = vperm.xlu0 %735, %v816_v4  }
  0x47   :  { %262 = vperm.xlu1 %732, %v803_v0  }
  0x48   :  { %737 = vset.pattern.permute.xlu0 %v766_v3 }
  0x49   :  { %58 = vperm.xlu0 %737, %v808_v1  }
  0x4b   :  { %270 = vperm.xlu1 %732, %v877_v15  }
  0x4d   :  { %63 = vperm.xlu0 %737, %v868_v12  }
  0x4f   :  { %278 = vperm.xlu1 %732, %v886_v17  }
  0x51   :  { %78 = vperm.xlu0 %737, %v877_v15  }
  0x53   :  { %286 = vperm.xlu1 %732, %v895_v19  }
  0x55   :  { %88 = vperm.xlu0 %737, %v886_v17  }
  0x57   :  { %294 = vperm.xlu1 %732, %v904_v21  }
  0x59   :  { %98 = vperm.xlu0 %737, %v895_v19  }
  0x5b   :  { %302 = vperm.xlu1 %732, %v913_v23  }
  0x5d   :  { %108 = vperm.xlu0 %737, %v904_v21  }
  0x5f   :  { %310 = vperm.xlu1 %732, %v922_v25  }
  0x61   :  { %118 = vperm.xlu0 %737, %v913_v23  }
  0x63   :  { %733 = vset.pattern.permute.xlu1 %v767_v13 }
  0x64   :  { %355 = vperm.xlu1 %733, %v808_v1  }
  0x65   :  { %128 = vperm.xlu0 %737, %v922_v25  }
  0x68   :  { %363 = vperm.xlu1 %733, %v803_v0  }
  0x69   :  { %158 = vperm.xlu0 %737, %v23_v28   ;;  %v582_v28 = vld [vmem:[%s1260_s3 + $0x58] sm:$0xff] }
  0x6c   :  { %367 = vperm.xlu1 %733, %v816_v4  }
  0x6d   :  { %168 = vperm.xlu0 %737, %v25_v29  }
  0x70   :  { %375 = vperm.xlu1 %733, %v823_v5  }
  0x71   :  { %178 = vperm.xlu0 %737, %v27_v30  }
  0x74   :  { %383 = vperm.xlu1 %733, %v830_v6  }
  0x75   :  { %188 = vperm.xlu0 %737, %v29_v31  }
  0x78   :  { %391 = vperm.xlu1 %733, %v837_v7  }
  0x79   :  { %198 = vperm.xlu0 %737, %v31_v32  }
  0x7c   :  { %399 = vperm.xlu1 %733, %v844_v8  }
  0x7d   :  { %208 = vperm.xlu0 %737, %v33_v33  }
  0x80   :  { %407 = vperm.xlu1 %733, %v851_v9  }
  0x81   :  { %v977_v35 = vpop.permute.xlu1 %68  ;;  %v979_v36 = vpop.permute.xlu0 %254  ;;  %218 = vperm.xlu0 %737, %v35_v34   ;;  %v583_v34 = vld [vmem:[%s1260_s3 + $0x60] sm:$0xff] }
  0x84   :  { %415 = vperm.xlu1 %733, %v858_v10  }
  0x85   :  { %v74_v38 = vpop.permute.xlu1 %73  ;;  %v267_v39 = vpop.permute.xlu0 %266  ;;  %228 = vperm.xlu0 %737, %v37_v37  }
  0x86   :  { %v143_v1 = vmul.f32 %v1033_v63, %v74_v38 }
  0x88   :  { %736 = vset.pattern.permute.xlu1 %v768_v27 }
  0x89   :  { %v84_v41 = vpop.permute.xlu1 %83  ;;  %v275_v42 = vpop.permute.xlu0 %274  ;;  %460 = vperm.xlu1 %736, %v868_v12   ;;  %589 = vperm.xlu0 %737, %v571_v40   ;;  %v580_v12 = vld [vmem:[%s1260_s3 + $0x48] sm:$0xff] }
  0x8a   :  { %v145_v13 = vmul.f32 %v1033_v63, %v84_v41 }
  0x8d   :  { %v94_v44 = vpop.permute.xlu1 %93  ;;  %v283_v45 = vpop.permute.xlu0 %282  ;;  %464 = vperm.xlu1 %736, %v803_v0   ;;  %599 = vperm.xlu0 %737, %v573_v43   ;;  %v1038_v0 = vld [vmem:[%s1257_s0 + $0x1] ss:$0 sm:$0xff] }
  0x8e   :  { %v324_v4 = vmul.f32 %v1038_v0, %v267_v39  ;;  %v147_v20 = vmul.f32 %v1033_v63, %v94_v44  ;;  %v328_v24 = vmul.f32 %v1038_v0, %v283_v45 }
  0x91   :  { %v104_v47 = vpop.permute.xlu1 %103  ;;  %v291_v48 = vpop.permute.xlu0 %290  ;;  %472 = vperm.xlu1 %736, %v877_v15   ;;  %604 = vperm.xlu0 %737, %v574_v46   ;;  %v326_v15 = vmul.f32 %v1038_v0, %v275_v42  ;;  %v585_v42 = vld [vmem:[%s1260_s3 + $0x70] sm:$0xff] }
  0x92   :  { %v149_v29 = vmul.f32 %v1033_v63, %v104_v47  ;;  %v330_v31 = vmul.f32 %v1038_v0, %v291_v48 }
  0x95   :  { %v114_v51 = vpop.permute.xlu1 %113  ;;  %v299_v52 = vpop.permute.xlu0 %298  ;;  %738 = vset.pattern.permute.xlu1 %v766_v3  ;;  %609 = vperm.xlu0 %737, %v575_v49  }
  0x96   :  { %594 = vperm.xlu1 %738, %v572_v50   ;;  %v151_v37 = vmul.f32 %v1033_v63, %v114_v51  ;;  %v332_v39 = vmul.f32 %v1038_v0, %v299_v52 }
  0x99   :  { %v124_v54 = vpop.permute.xlu1 %123  ;;  %v1008_v55 = vpop.permute.xlu0 %306  ;;  %614 = vperm.xlu0 %737, %v576_v53  }
  0x9a   :  { %739 = vset.pattern.permute.xlu1 %v768_v27  ;;  %v153_v43 = vmul.f32 %v1033_v63, %v124_v54  ;;  %v334_v45 = vmul.f32 %v1038_v0, %v1008_v55 }
  0x9b   :  { %476 = vperm.xlu1 %739, %v823_v5  }
  0x9d   :  { %v1015_v57 = vpop.permute.xlu1 %133  ;;  %v1017_v58 = vpop.permute.xlu0 %314  ;;  %619 = vperm.xlu0 %737, %v577_v56  }
  0x9e   :  { %v155_v48 = vmul.f32 %v1033_v63, %v1015_v57  ;;  %v336_v50 = vmul.f32 %v1038_v0, %v1017_v58 }
  0x9f   :  { %480 = vperm.xlu1 %739, %v886_v17  }
  0xa1   :  { %v1023_v60 = vpop.permute.xlu1 %163  ;;  %624 = vperm.xlu0 %737, %v578_v59  }
  0xa2   :  { %v1025_v61 = vpop.permute.xlu0 %359 }
  0xa3   :  { %484 = vperm.xlu1 %739, %v830_v6  }
  0xa5   :  { %v174_v2 = vpop.permute.xlu1 %173  ;;  %629 = vperm.xlu0 %737, %v579_v62   ;;  %v1120_v62 = vld [vmem:[%s1257_s0 + $0x2] ss:$0 sm:$0xff] }
  0xa6   :  { %v239_v5 = vadd.f32 %v174_v2, %v143_v1  ;;  %v1043_v11 = vpop.permute.xlu0 %371 }
  0xa7   :  { %488 = vperm.xlu1 %739, %v895_v19  }
  0xa8   :  { %v1050_v14 = vadd.f32 %v324_v4, %v239_v5  ;;  %v423_v5 = vmul.f32 %v1120_v62, %v1025_v61  ;;  %v321_v61 = vmul.f32 %v1038_v0, %v979_v36 }
  0xa9   :  { %v184_v6 = vpop.permute.xlu1 %183  ;;  %634 = vperm.xlu0 %737, %v580_v12  }
  0xaa   :  { %v241_v16 = vadd.f32 %v184_v6, %v145_v13  ;;  %v1053_v17 = vpop.permute.xlu0 %379 }
  0xab   :  { %492 = vperm.xlu1 %739, %v837_v7  }
  0xac   :  { %v1060_v19 = vadd.f32 %v326_v15, %v241_v16 }
  0xad   :  { %v194_v22 = vpop.permute.xlu1 %193  ;;  %639 = vperm.xlu0 %737, %v581_v18  }
  0xae   :  { %v243_v26 = vadd.f32 %v194_v22, %v147_v20  ;;  %v1063_v27 = vpop.permute.xlu0 %387 }
  0xaf   :  { %496 = vperm.xlu1 %739, %v904_v21  }
  0xb0   :  { %v1070_v7 = vadd.f32 %v328_v24, %v243_v26 }
  0xb1   :  { %v204_v30 = vpop.permute.xlu1 %203  ;;  %644 = vperm.xlu0 %737, %v582_v28  }
  0xb2   :  { %v245_v32 = vadd.f32 %v204_v30, %v149_v29  ;;  %v1073_v33 = vpop.permute.xlu0 %395 }
  0xb3   :  { %500 = vperm.xlu1 %739, %v844_v8  }
  0xb4   :  { %v1080_v21 = vadd.f32 %v330_v31, %v245_v32 }
  0xb5   :  { %v214_v38 = vpop.permute.xlu1 %213  ;;  %649 = vperm.xlu0 %737, %v583_v34   ;;  %v1138_v34 = vld [vmem:[%s1257_s0 + $0x3] ss:$0 sm:$0xff] }
  0xb6   :  { %v247_v40 = vadd.f32 %v214_v38, %v151_v37  ;;  %v1083_v41 = vpop.permute.xlu0 %403 }
  0xb7   :  { %504 = vperm.xlu1 %739, %v913_v23  }
  0xb8   :  { %v1090_v8 = vadd.f32 %v332_v39, %v247_v40 }
  0xb9   :  { %v224_v44 = vpop.permute.xlu1 %223  ;;  %659 = vperm.xlu0 %737, %v585_v42  }
  0xba   :  { %v249_v46 = vadd.f32 %v224_v44, %v153_v43  ;;  %v1094_v47 = vpop.permute.xlu0 %411 }
  0xbb   :  { %508 = vperm.xlu1 %739, %v851_v9   ;;  %v584_v9 = vld [vmem:[%s1260_s3 + $0x68] sm:$0xff] }
  0xbc   :  { %v1099_v49 = vadd.f32 %v334_v45, %v249_v46 }
  0xbd   :  { %v234_v23 = vpop.permute.xlu1 %233 }
  0xbe   :  { %v251_v51 = vadd.f32 %v234_v23, %v155_v48 }
  0xbf   :  { %512 = vperm.xlu1 %739, %v922_v25   ;;  %v457_v52 = vpop.permute.xlu0 %456  ;;  %v586_v25 = vld [vmem:[%s1260_s3 + $0x78] sm:$0xff] }
  0xc0   :  { %v1104_v53 = vadd.f32 %v336_v50, %v251_v51  ;;  %v523_v43 = vmul.f32 %v1138_v34, %v457_v52  ;;  %v426_v52 = vmul.f32 %v1120_v62, %v1043_v11 }
  0xc2   :  { %v259_v54 = vpop.permute.xlu1 %258 }
  0xc3   :  { %516 = vperm.xlu1 %739, %v858_v10   ;;  %v469_v55 = vpop.permute.xlu0 %468  ;;  %v322_v2 = vmul.f32 %v1038_v0, %v259_v54 }
  0xc4   :  { %v526_v45 = vmul.f32 %v1138_v34, %v469_v55 }
  0xc6   :  { %v1110_v56 = vpop.permute.xlu1 %262 }
  0xc7   :  { %740 = vset.pattern.permute.xlu1 %v766_v3 }
  0xc8   :  { %v59_v57 = vpop.permute.xlu0 %58  ;;  %654 = vperm.xlu1 %740, %v584_v9  }
  0xca   :  { %v271_v58 = vpop.permute.xlu1 %270 }
  0xcb   :  { %v325_v54 = vmul.f32 %v1038_v0, %v271_v58 }
  0xcc   :  { %v64_v59 = vpop.permute.xlu0 %63  ;;  %664 = vperm.xlu1 %740, %v586_v25  }
  0xcd   :  { %v141_v10 = vmul.f32 %v1033_v63, %v64_v59 }
  0xce   :  { %v279_v1 = vpop.permute.xlu1 %278 }
  0xcf   :  { %v237_v3 = vadd.f32 %v1023_v60, %v141_v10  ;;  %v140_v60 = vmul.f32 %v1033_v63, %v59_v57  ;;  %v327_v59 = vmul.f32 %v1038_v0, %v279_v1 }
  0xd0   :  { %v79_v4 = vpop.permute.xlu0 %78 }
  0xd1   :  { %v338_v12 = vadd.f32 %v322_v2, %v237_v3  ;;  %v144_v46 = vmul.f32 %v1033_v63, %v79_v4  ;;  %v428_v3 = vmul.f32 %v1120_v62, %v1053_v17 }
  0xd2   :  { %v287_v13 = vpop.permute.xlu1 %286 }
  0xd3   :  { %v1126_v6 = vadd.f32 %v423_v5, %v338_v12  ;;  %v329_v11 = vmul.f32 %v1038_v0, %v287_v13  ;;  %v432_v13 = vmul.f32 %v1120_v62, %v1073_v33  ;;  %v142_v33 = vmul.f32 %v1033_v63, %v977_v35 }
  0xd4   :  { %v89_v15 = vpop.permute.xlu0 %88 }
  0xd5   :  { %v146_v57 = vmul.f32 %v1033_v63, %v89_v15 }
  0xd6   :  { %v295_v16 = vpop.permute.xlu1 %294 }
  0xd8   :  { %v99_v18 = vpop.permute.xlu0 %98 }
  0xd9   :  { %v148_v4 = vmul.f32 %v1033_v63, %v99_v18  ;;  %v331_v18 = vmul.f32 %v1038_v0, %v295_v16  ;;  %v434_v16 = vmul.f32 %v1120_v62, %v1083_v41 }
  0xda   :  { %v303_v20 = vpop.permute.xlu1 %302 }
  0xdc   :  { %v109_v22 = vpop.permute.xlu0 %108 }
  0xdd   :  { %v150_v1 = vmul.f32 %v1033_v63, %v109_v22  ;;  %v333_v22 = vmul.f32 %v1038_v0, %v303_v20 }
  0xde   :  { %v1128_v24 = vpop.permute.xlu1 %310 }
  0xe0   :  { %v119_v26 = vpop.permute.xlu0 %118 }
  0xe3   :  { %v356_v28 = vpop.permute.xlu1 %355 }
  0xe4   :  { %v129_v29 = vpop.permute.xlu0 %128  ;;  %v422_v37 = vmul.f32 %v1120_v62, %v356_v28 }
  0xe7   :  { %v1131_v30 = vpop.permute.xlu1 %363 }
  0xe8   :  { %v159_v31 = vpop.permute.xlu0 %158 }
  0xe9   :  { %v236_v32 = vadd.f32 %v159_v31, %v140_v60  ;;  %v430_v60 = vmul.f32 %v1120_v62, %v1063_v27 }
  0xeb   :  { %v337_v38 = vadd.f32 %v321_v61, %v236_v32  ;;  %v368_v39 = vpop.permute.xlu1 %367 }
  0xec   :  { %v425_v40 = vmul.f32 %v1120_v62, %v368_v39  ;;  %v169_v42 = vpop.permute.xlu0 %168 }
  0xed   :  { %v438_v44 = vadd.f32 %v422_v37, %v337_v38  ;;  %v152_v38 = vmul.f32 %v1033_v63, %v119_v26 }
  0xee   :  { %v441_v36 = vadd.f32 %v425_v40, %v1050_v14 }
  0xef   :  { %v1146_v48 = vpop.permute.xlu1 %375  ;;  %v1148_v23 = vadd.f32 %v523_v43, %v438_v44 }
  0xf0   :  { %v179_v50 = vpop.permute.xlu0 %178  ;;  %v1150_v51 = vadd.f32 %v526_v45, %v441_v36  ;;  %v154_v45 = vmul.f32 %v1033_v63, %v129_v29  ;;  %v323_v29 = vmul.f32 %v1038_v0, %v1110_v56  ;;  %v424_v63 = vmul.f32 %v1120_v62, %v1131_v30 }
  0xf1   :  { %v240_v9 = vadd.f32 %v179_v50, %v144_v46  ;;  %v335_v50 = vmul.f32 %v1038_v0, %v1128_v24 }
  0xf3   :  { %v341_v55 = vadd.f32 %v325_v54, %v240_v9  ;;  %v1156_v25 = vpop.permute.xlu1 %383  ;;  %v238_v9 = vadd.f32 %v169_v42, %v142_v33 }
  0xf4   :  { %v189_v14 = vpop.permute.xlu0 %188 }
  0xf5   :  { %v242_v10 = vadd.f32 %v189_v14, %v146_v57  ;;  %v442_v2 = vadd.f32 %v426_v52, %v341_v55  ;;  %v436_v52 = vmul.f32 %v1120_v62, %v1094_v47  ;;  %v339_v35 = vadd.f32 %v323_v29, %v238_v9 }
  0xf7   :  { %v343_v58 = vadd.f32 %v327_v59, %v242_v10  ;;  %v1162_v5 = vpop.permute.xlu1 %391 }
  0xf8   :  { %v199_v12 = vpop.permute.xlu0 %198 }
  0xf9   :  { %v244_v15 = vadd.f32 %v199_v12, %v148_v4  ;;  %v1165_v28 = vadd.f32 %v428_v3, %v343_v58  ;;  %v440_v3 = vadd.f32 %v424_v63, %v339_v35  ;;  %v555_v12 = vmax.f32 %v1148_v23, 0.0 }
  0xfb   :  { %v345_v31 = vadd.f32 %v329_v11, %v244_v15  ;;  %v1170_v61 = vpop.permute.xlu1 %399 }
  0xfc   :  { %v209_v17 = vpop.permute.xlu0 %208 }
  0xfd   :  { %v246_v32 = vadd.f32 %v209_v17, %v150_v1  ;;  %v1173_v37 = vadd.f32 %v430_v60, %v345_v31 }
  0xff   :  { %v347_v39 = vadd.f32 %v331_v18, %v246_v32  ;;  %v1178_v40 = vpop.permute.xlu1 %407  ;;  %v427_v18 = vmul.f32 %v1120_v62, %v1146_v48  ;;  %v429_v48 = vmul.f32 %v1120_v62, %v1156_v25  ;;  %v431_v25 = vmul.f32 %v1120_v62, %v1162_v5 }
 0x100   :  { %v219_v27 = vpop.permute.xlu0 %218  ;;  %v433_v5 = vmul.f32 %v1120_v62, %v1170_v61 }
 0x101   :  { %v248_v43 = vadd.f32 %v219_v27, %v152_v38  ;;  %v1181_v44 = vadd.f32 %v432_v13, %v347_v39  ;;  %v443_v23 = vadd.f32 %v427_v18, %v1060_v19  ;;  %v445_v19 = vadd.f32 %v429_v48, %v1070_v7 }
 0x103   :  { %v349_v36 = vadd.f32 %v333_v22, %v248_v43  ;;  %v1186_v46 = vpop.permute.xlu1 %415 }
 0x104   :  { %v229_v26 = vpop.permute.xlu0 %228 }
 0x105   :  { %v250_v54 = vadd.f32 %v229_v26, %v154_v45  ;;  %v1192_v20 = vadd.f32 %v434_v16, %v349_v36 }
 0x107   :  { %v351_v41 = vadd.f32 %v335_v50, %v250_v54 }
 0x108   :  { %v461_v57 = vpop.permute.xlu1 %460  ;;  %v590_v55 = vpop.permute.xlu0 %589 }
 0x109   :  { %v1198_v14 = vadd.f32 %v436_v52, %v351_v41  ;;  %v524_v24 = vmul.f32 %v1138_v34, %v461_v57  ;;  %v667_v31 = vmul.f32 %v590_v55, %v555_v12 }
 0x10b   :  { %v540_v47 = vadd.f32 %v524_v24, %v1126_v6  ;;  %v558_v6 = vmax.f32 %v1150_v51, 0.0 }
 0x10c   :  { %v465_v59 = vpop.permute.xlu1 %464  ;;  %v600_v10 = vpop.permute.xlu0 %599 }
 0x10d   :  { %v525_v42 = vmul.f32 %v1138_v34, %v465_v59  ;;  %v556_v30 = vmax.f32 %v540_v47, 0.0 }
 0x10f   :  { %v541_v4 = vadd.f32 %v525_v42, %v440_v3 }
 0x110   :  { %v473_v58 = vpop.permute.xlu1 %472  ;;  %v605_v0 = vpop.permute.xlu0 %604 }
 0x111   :  { %v527_v56 = vmul.f32 %v1138_v34, %v473_v58  ;;  %v557_v11 = vmax.f32 %v541_v4, 0.0  ;;  %v670_v27 = vmul.f32 %v605_v0, %v558_v6  ;;  %v447_v0 = vadd.f32 %v431_v25, %v1080_v21 }
 0x112   :  { %v449_v21 = vadd.f32 %v433_v5, %v1090_v8  ;;  %v435_v8 = vmul.f32 %v1120_v62, %v1178_v40 }
 0x113   :  { %v543_v15 = vadd.f32 %v527_v56, %v442_v2  ;;  %v669_v32 = vmul.f32 %v600_v10, %v557_v11 }
 0x114   :  { %v610_v60 = vpop.permute.xlu0 %609 }
 0x115   :  { %v595_v1 = vpop.permute.xlu1 %594  ;;  %v559_v13 = vmax.f32 %v543_v15, 0.0 }
 0x116   :  { %v668_v17 = vmul.f32 %v595_v1, %v556_v30 }
 0x117   :  { %v671_v16 = vmul.f32 %v610_v60, %v559_v13 }
 0x118   :  { %v683_v38 = vadd.f32 %v668_v17, %v667_v31  ;;  %v615_v39 = vpop.permute.xlu0 %614 }
 0x11a   :  { %v684_v22 = vadd.f32 %v683_v38, %v669_v32  ;;  %v477_v43 = vpop.permute.xlu1 %476 }
 0x11b   :  { %v528_v2 = vmul.f32 %v1138_v34, %v477_v43 }
 0x11c   :  { %v685_v45 = vadd.f32 %v684_v22, %v670_v27  ;;  %v620_v36 = vpop.permute.xlu0 %619 }
 0x11d   :  { %v544_v33 = vadd.f32 %v528_v2, %v443_v23 }
 0x11e   :  { %v686_v26 = vadd.f32 %v685_v45, %v671_v16  ;;  %v481_v50 = vpop.permute.xlu1 %480 }
 0x11f   :  { %v560_v51 = vmax.f32 %v544_v33, 0.0  ;;  %v529_v54 = vmul.f32 %v1138_v34, %v481_v50 }
 0x120   :  { %v625_v9 = vpop.permute.xlu0 %624 }
 0x121   :  { %v672_v52 = vmul.f32 %v615_v39, %v560_v51  ;;  %v545_v41 = vadd.f32 %v529_v54, %v1165_v28 }
 0x122   :  { %v485_v29 = vpop.permute.xlu1 %484 }
 0x123   :  { %v687_v57 = vadd.f32 %v686_v26, %v672_v52  ;;  %v561_v55 = vmax.f32 %v545_v41, 0.0  ;;  %v530_v35 = vmul.f32 %v1138_v34, %v485_v29  ;;  %v451_v41 = vadd.f32 %v435_v8, %v1099_v49 }
 0x124   :  { %v630_v63 = vpop.permute.xlu0 %629  ;;  %v437_v29 = vmul.f32 %v1120_v62, %v1186_v46 }
 0x125   :  { %v673_v24 = vmul.f32 %v620_v36, %v561_v55  ;;  %v546_v59 = vadd.f32 %v530_v35, %v445_v19 }
 0x126   :  { %v489_v10 = vpop.permute.xlu1 %488  ;;  %v453_v40 = vadd.f32 %v437_v29, %v1104_v53  ;;  %v704_v53 = vstv %s1261_s4 }
 0x127   :  { %v688_v42 = vadd.f32 %v687_v57, %v673_v24  ;;  %v562_v3 = vmax.f32 %v546_v59, 0.0  ;;  %v531_v47 = vmul.f32 %v1138_v34, %v489_v10 }
 0x128   :  { %v635_v58 = vpop.permute.xlu0 %634 }
 0x129   :  { %v674_v4 = vmul.f32 %v625_v9, %v562_v3  ;;  %v547_v28 = vadd.f32 %v531_v47, %v1173_v37 }
 0x12a   :  { %v493_v7 = vpop.permute.xlu1 %492 }
 0x12b   :  { %v689_v56 = vadd.f32 %v688_v42, %v674_v4  ;;  %v563_v12 = vmax.f32 %v547_v28, 0.0  ;;  %v532_v11 = vmul.f32 %v1138_v34, %v493_v7 }
 0x12c   :  { %v640_v18 = vpop.permute.xlu0 %639 }
 0x12d   :  { %v675_v15 = vmul.f32 %v630_v63, %v563_v12  ;;  %v548_v60 = vadd.f32 %v532_v11, %v447_v0 }
 0x12e   :  { %v497_v30 = vpop.permute.xlu1 %496 }
 0x12f   :  { %v690_v1 = vadd.f32 %v689_v56, %v675_v15  ;;  %v564_v31 = vmax.f32 %v548_v60, 0.0  ;;  %v533_v17 = vmul.f32 %v1138_v34, %v497_v30 }
 0x130   :  { %v645_v43 = vpop.permute.xlu0 %644 }
 0x131   :  { %v676_v37 = vmul.f32 %v635_v58, %v564_v31  ;;  %v549_v32 = vadd.f32 %v533_v17, %v1181_v44 }
 0x132   :  { %v501_v6 = vpop.permute.xlu1 %500 }
 0x133   :  { %v691_v13 = vadd.f32 %v690_v1, %v676_v37  ;;  %v565_v38 = vmax.f32 %v549_v32, 0.0  ;;  %v534_v39 = vmul.f32 %v1138_v34, %v501_v6 }
 0x134   :  { %v650_v50 = vpop.permute.xlu0 %649 }
 0x135   :  { %v677_v27 = vmul.f32 %v640_v18, %v565_v38  ;;  %v550_v22 = vadd.f32 %v534_v39, %v449_v21 }
 0x136   :  { %v505_v23 = vpop.permute.xlu1 %504 }
 0x137   :  { %v692_v61 = vadd.f32 %v691_v13, %v677_v27  ;;  %v566_v2 = vmax.f32 %v550_v22, 0.0  ;;  %v535_v16 = vmul.f32 %v1138_v34, %v505_v23 }
 0x138   :  { %v660_v25 = vpop.permute.xlu0 %659 }
 0x139   :  { %v678_v45 = vmul.f32 %v645_v43, %v566_v2  ;;  %v551_v36 = vadd.f32 %v535_v16, %v1192_v20 }
 0x13a   :  { %v509_v33 = vpop.permute.xlu1 %508 }
 0x13b   :  { %v567_v44 = vmax.f32 %v551_v36, 0.0  ;;  %v693_v26 = vadd.f32 %v692_v61, %v678_v45  ;;  %v536_v51 = vmul.f32 %v1138_v34, %v509_v33 }
 0x13d   :  { %v679_v48 = vmul.f32 %v650_v50, %v567_v44  ;;  %v552_v20 = vadd.f32 %v536_v51, %v451_v41 }
 0x13e   :  { %v513_v54 = vpop.permute.xlu1 %512 }
 0x13f   :  { %v537_v9 = vmul.f32 %v1138_v34, %v513_v54  ;;  %v694_v52 = vadd.f32 %v693_v26, %v679_v48  ;;  %v568_v24 = vmax.f32 %v552_v20, 0.0 }
 0x141   :  { %v553_v19 = vadd.f32 %v537_v9, %v1198_v14 }
 0x142   :  { %v517_v57 = vpop.permute.xlu1 %516 }
 0x143   :  { %v538_v55 = vmul.f32 %v1138_v34, %v517_v57  ;;  %v569_v35 = vmax.f32 %v553_v19, 0.0 }
 0x145   :  { %v554_v63 = vadd.f32 %v538_v55, %v453_v40  ;;  %v681_v42 = vmul.f32 %v660_v25, %v569_v35 }
 0x147   :  { %v655_v59 = vpop.permute.xlu1 %654  ;;  %v570_v49 = vmax.f32 %v554_v63, 0.0 }
 0x148   :  { %v680_v10 = vmul.f32 %v655_v59, %v568_v24 }
 0x14a   :  { %v695_v3 = vadd.f32 %v694_v52, %v680_v10 }
 0x14b   :  { %v665_v47 = vpop.permute.xlu1 %664 }
 0x14c   :  { %v682_v4 = vmul.f32 %v665_v47, %v570_v49  ;;  %v696_v62 = vadd.f32 %v695_v3, %v681_v42 }
 0x14e   :  { %v697_v46 = vadd.f32 %v696_v62, %v682_v4 }
 0x150   :  { %v698_v28 = vrot.slane %v697_v46, 4 }
 0x152   :  { %v699_v14 = vadd.f32 %v698_v28, %v697_v46 }
 0x154   :  { %v700_v58 = vrot.slane %v699_v14, 2 }
 0x156   :  { %v701_v7 = vadd.f32 %v700_v58, %v699_v14 }
 0x158   :  { %v702_v34 = vrot.slane %v701_v7, 1 }
 0x15a   :  { %v703_v0 = vadd.f32 %v702_v34, %v701_v7 }
 0x15c   :  { %v705_v56 = vadd.f32 %v704_v53, %v703_v0 }
 0x15e   :  { %706 = vst [vmem:[#allocation3] sm:$0x1] %v705_v56 }
 0x15f   :  { %752 = shalt.err (!%p749_p4)
}
 0x160   :  { %s753_s23 = scalar_lea.hbm %s1262_s5, 16 }
 0x161   :  { %p754_p5 = scmp.ne.s32.totalorder %s1262_s5, %s753_s23  ;;  %p757_p6 = scmp.lt.u32.totalorder %s753_s23, %s1262_s5 }
 0x163   :  { %p759_p7 = pnand %p757_p6, %p754_p5 }
 0x165   :  { %762 = shalt.err (!%p759_p7)
}
 0x166   :  { %716 = dma.vmem_to_hbm [thread:$0]  %s714_s18, 16, %s1262_s5, [#allocation4]  }
 0x167   :  { %763 = dma.done.wait [#allocation4], 16  }
 0x168   :  { %764 = vsyncadd [#allocation4], 4294967280 }
 0x169   :  { %720 = vsyncpa [#allocation4], 1 }

</bundles_post_ra>
